<compile_context>
chip_gen: v5e
topology: v5e:2x2
jax: 0.10.0
libtpu: 0.0.40
codegen_flags: <defaults>
</compile_context>

<pallas_src>
import jax
import jax.numpy as jnp
from jax.experimental import pallas as pl
from jax.experimental.pallas import tpu as pltpu

LANE = 128      # vreg lane width
SUBLANE = 8     # f32 sublane granularity


def lstm_predictor_kernel(x_ref, wih_ref, whh_ref, b_ref, wout_ref, bout_ref, out_ref):
    """Full recurrent hot path in-kernel; final linear applied to the last hidden state."""
    seq_len = x_ref.shape[0]
    Hk = whh_ref.shape[0]            # sublane-padded real hidden size (contraction dim)
    Hp = whh_ref.shape[1] // 4       # lane-padded per-gate width (multiple of 128)

    # --- Hoisted input projection: one (S, Ip) @ (Ip, 4*Hp) bf16 MXU matmul for all steps -------
    # i/f/o columns of weights and bias were pre-scaled by 0.5 at pack time (tanh-form sigmoid).
    xw = (jnp.dot(x_ref[...], wih_ref[...], preferred_element_type=jnp.float32)
          + b_ref[...])

    whh = whh_ref[...]               # (Hk, 4*Hp) bf16, ~32 KiB: stays hot across the unrolled loop

    h = jnp.zeros((1, Hp), jnp.float32)
    c = jnp.zeros((1, Hp), jnp.float32)

    # --- Serial recurrence, fully unrolled (seq_len is small & static) --------------------------
    for t in range(seq_len):
        g_pre = xw[t:t + 1, :] + jnp.dot(h[:, :Hk].astype(whh.dtype), whh,
                                         preferred_element_type=jnp.float32)
        act = jnp.tanh(g_pre)                      # single EUP pass for all four gate blocks
        sig = act[:, :3 * Hp] * 0.5 + 0.5          # i, f, o (preactivations were pre-halved)
        i_g = sig[:, 0 * Hp:1 * Hp]
        f_g = sig[:, 1 * Hp:2 * Hp]
        o_g = sig[:, 2 * Hp:3 * Hp]
        g_g = act[:, 3 * Hp:]
        c = f_g * c + i_g * g_g
        h = o_g * jnp.tanh(c)

    # predictions[-1] == linear(h_T)
    out_ref[...] = (jnp.dot(h[:, :Hk].astype(wout_ref.dtype), wout_ref[...],
                            preferred_element_type=jnp.float32)
                    + bout_ref[...])


def _round_up(n, m):
    return ((n + m - 1) // m) * m


def pack_lstm_params(w_ih, w_hh, b_ih, b_hh, w_out, b_out, weight_dtype=jnp.bfloat16):
    """One-time (model-init) repack of nn.LSTM / nn.Linear params for the kernel.

    Gate blocks are reordered [i; f; g; o] -> [i; f; o; g], the i/f/o blocks are pre-scaled by
    0.5 (tanh-form sigmoid), each gate block is zero-padded to the lane width, and weights are
    cast to bf16. Keep the result and pass it to lstm_predictor_apply on every call.
    """
    H = w_hh.shape[1]
    input_size = w_ih.shape[1]
    out_size = w_out.shape[0]
    Hp = _round_up(H, LANE)        # lane-aligned per-gate width
    Hk = _round_up(H, SUBLANE)     # contraction dim for the recurrent / output matmuls
    Ip = _round_up(input_size, SUBLANE)

    def repack(w):
        blocks = [(0.5, w[0 * H:1 * H]), (0.5, w[1 * H:2 * H]),
                  (0.5, w[3 * H:4 * H]), (1.0, w[2 * H:3 * H])]          # i, f, o, g
        pad_tail = ((0, Hp - H),) + ((0, 0),) * (w.ndim - 1)
        return jnp.concatenate([jnp.pad(s * b, pad_tail) for s, b in blocks], axis=0)

    w_ih = jnp.asarray(w_ih, jnp.float32)                                   # (4H, input_size)
    w_hh = jnp.asarray(w_hh, jnp.float32)                                   # (4H, H)
    bias = jnp.asarray(b_ih, jnp.float32) + jnp.asarray(b_hh, jnp.float32)  # (4H,)

    # W_ih: reorder/scale/pad gate rows, pad K to Ip, transpose -> (Ip, 4*Hp) bf16
    wih_t = jnp.pad(repack(w_ih), ((0, 0), (0, Ip - input_size))).T.astype(weight_dtype)
    # W_hh: reorder/scale/pad gate rows, pad K to Hk only, transpose -> (Hk, 4*Hp) bf16
    whh_t = jnp.pad(repack(w_hh), ((0, 0), (0, Hk - H))).T.astype(weight_dtype)
    # Combined bias, reordered/scaled/padded -> (1, 4*Hp) f32 (bias stays f32)
    b_r = repack(bias[:, None])[:, 0].reshape(1, 4 * Hp)
    # Output head: (out_size, H) -> pad K to Hk -> transpose -> (Hk, out_size) bf16
    wout_t = jnp.pad(jnp.asarray(w_out, jnp.float32),
                     ((0, 0), (0, Hk - H))).T.astype(weight_dtype)
    bout = jnp.asarray(b_out, jnp.float32).reshape(1, out_size)
    return wih_t, whh_t, b_r, wout_t, bout


@jax.jit
def lstm_predictor_apply(x, wih_t, whh_t, b_r, wout_t, bout):
    """x: (seq_len, input_size) float32. Returns (output_size,) == predictions[-1]."""
    seq_len, input_size = x.shape
    Ip = wih_t.shape[0]
    out_size = wout_t.shape[1]
    # Only per-call prep: pad features to the sublane width and cast to the weight dtype.
    x_p = jnp.pad(jnp.asarray(x, jnp.float32),
                  ((0, 0), (0, Ip - input_size))).astype(wih_t.dtype)

    vmem = pl.BlockSpec(memory_space=pltpu.MemorySpace.VMEM)
    out = pl.pallas_call(
        lstm_predictor_kernel,
        out_shape=jax.ShapeDtypeStruct((1, out_size), jnp.float32),
        in_specs=[vmem] * 6,
        out_specs=vmem,
    )(x_p, wih_t, whh_t, b_r, wout_t, bout)
    return out[0]


def _reference(x, w_ih, w_hh, b_ih, b_hh, w_out, b_out):
    """Pure-JAX reference matching torch.nn.LSTM + nn.Linear semantics (gate order i,f,g,o)."""
    H = w_hh.shape[1]
    h = jnp.zeros((H,), jnp.float32)
    c = jnp.zeros((H,), jnp.float32)
    for t in range(x.shape[0]):
        g = w_ih @ x[t] + b_ih + w_hh @ h + b_hh
        i = jax.nn.sigmoid(g[0 * H:1 * H])
        f = jax.nn.sigmoid(g[1 * H:2 * H])
        gg = jnp.tanh(g[2 * H:3 * H])
        o = jax.nn.sigmoid(g[3 * H:4 * H])
        c = f * c + i * gg
        h = o * jnp.tanh(c)
    return w_out @ h + b_out


if __name__ == "__main__":
    seq_len, input_size, hidden, output_size = 8, 4, 32, 4

    key = jax.random.PRNGKey(0)
    ks = jax.random.split(key, 8)
    bound = 1.0 / jnp.sqrt(hidden)

    # Deterministic synthetic parameters (same shapes as nn.LSTM / nn.Linear).
    w_ih = jax.random.uniform(ks[0], (4 * hidden, input_size), jnp.float32, -bound, bound)
    w_hh = jax.random.uniform(ks[1], (4 * hidden, hidden), jnp.float32, -bound, bound)
    b_ih = jax.random.uniform(ks[2], (4 * hidden,), jnp.float32, -bound, bound)
    b_hh = jax.random.uniform(ks[3], (4 * hidden,), jnp.float32, -bound, bound)
    w_out = jax.random.uniform(ks[4], (output_size, hidden), jnp.float32, -bound, bound)
    b_out = jax.random.uniform(ks[5], (output_size,), jnp.float32, -bound, bound)

    x = jax.random.normal(ks[6], (seq_len, input_size), jnp.float32)

    # --- model init: one-time repack (hoisted out of the per-call path) -------------------------
    packed = pack_lstm_params(w_ih, w_hh, b_ih, b_hh, w_out, b_out)
    packed = tuple(jax.block_until_ready(p) for p in packed)

    # --- per-call path: jitted pad/cast + pallas_call only --------------------------------------
    pred = lstm_predictor_apply(x, *packed)
    pred = jax.block_until_ready(pred)
    assert pred.shape == (output_size,)

    # Correctness vs. a reference with weights rounded to the kernel's storage dtype (isolates
    # the deliberate bf16 weight quantization from the kernel math itself).
    q = lambda a: a.astype(jnp.bfloat16).astype(jnp.float32)
    ref_bf16 = _reference(q(x), q(w_ih), q(w_hh), b_ih, b_hh, q(w_out), b_out)
    assert jnp.allclose(pred, ref_bf16, atol=5e-3, rtol=1e-2), (pred, ref_bf16)

    # Correctness vs. the full-f32 PyTorch-semantics reference (looser tol: bf16 weight storage
    # is the intentional perf choice from the review; f32 accumulation keeps the error ~1e-3).
    ref_f32 = _reference(x, w_ih, w_hh, b_ih, b_hh, w_out, b_out)
    assert jnp.allclose(pred, ref_f32, atol=2e-2, rtol=2e-2), (pred, ref_f32)

    print("KERNEL_OK")
</pallas_src>

<mosaic_0001>
module attributes {stable_mosaic.version = 11 : i64} {
  func.func @lstm_predictor_kernel(%arg0: memref<8x8xbf16, #tpu.memory_space<vmem>>, %arg1: memref<8x512xbf16, #tpu.memory_space<vmem>>, %arg2: memref<32x512xbf16, #tpu.memory_space<vmem>>, %arg3: memref<1x512xf32, #tpu.memory_space<vmem>>, %arg4: memref<32x4xbf16, #tpu.memory_space<vmem>>, %arg5: memref<1x4xf32, #tpu.memory_space<vmem>>, %arg6: memref<1x4xf32, #tpu.memory_space<vmem>>) attributes {dimension_semantics = [], scalar_prefetch = 0 : i64, scratch_operands = 0 : i64, tpu.core_type = #tpu.core_type<tc>} {
    %c0 = arith.constant 0 : index
    %c0_0 = arith.constant 0 : index
    %0 = vector.load %arg0[%c0, %c0_0] : memref<8x8xbf16, #tpu.memory_space<vmem>>, vector<8x8xbf16>
    %c0_1 = arith.constant 0 : index
    %c0_2 = arith.constant 0 : index
    %1 = vector.load %arg1[%c0_1, %c0_2] : memref<8x512xbf16, #tpu.memory_space<vmem>>, vector<8x512xbf16>
    %cst = arith.constant dense<0.000000e+00> : vector<8x512xf32>
    %2 = tpu.matmul %0, %1, %cst {dimension_numbers = #tpu.dot_dimension_numbers<[1], [0], [0], [1], [0, 0, 1, 1], [], []>} : vector<8x8xbf16>, vector<8x512xbf16>, vector<8x512xf32> -> vector<8x512xf32>
    %c0_3 = arith.constant 0 : index
    %c0_4 = arith.constant 0 : index
    %3 = vector.load %arg3[%c0_3, %c0_4] : memref<1x512xf32, #tpu.memory_space<vmem>>, vector<1x512xf32>
    %4 = vector.broadcast %3 : vector<1x512xf32> to vector<8x512xf32>
    %5 = arith.addf %2, %4 : vector<8x512xf32>
    %c0_5 = arith.constant 0 : index
    %c0_6 = arith.constant 0 : index
    %6 = vector.load %arg2[%c0_5, %c0_6] : memref<32x512xbf16, #tpu.memory_space<vmem>>, vector<32x512xbf16>
    %cst_7 = arith.constant 0.000000e+00 : f32
    %7 = vector.broadcast %cst_7 : f32 to vector<1x128xf32>
    %cst_8 = arith.constant 0.000000e+00 : f32
    %8 = vector.broadcast %cst_8 : f32 to vector<1x128xf32>
    %9 = vector.extract_strided_slice %5 {offsets = [0, 0], sizes = [1, 512], strides = [1, 1]} : vector<8x512xf32> to vector<1x512xf32>
    %10 = vector.extract_strided_slice %7 {offsets = [0, 0], sizes = [1, 32], strides = [1, 1]} : vector<1x128xf32> to vector<1x32xf32>
    %11 = arith.truncf %10 : vector<1x32xf32> to vector<1x32xbf16>
    %cst_9 = arith.constant dense<0.000000e+00> : vector<1x512xf32>
    %12 = tpu.matmul %11, %6, %cst_9 {dimension_numbers = #tpu.dot_dimension_numbers<[1], [0], [0], [1], [0, 0, 1, 1], [], []>} : vector<1x32xbf16>, vector<32x512xbf16>, vector<1x512xf32> -> vector<1x512xf32>
    %13 = arith.addf %9, %12 : vector<1x512xf32>
    %14 = math.tanh %13 : vector<1x512xf32>
    %15 = vector.extract_strided_slice %14 {offsets = [0, 0], sizes = [1, 384], strides = [1, 1]} : vector<1x512xf32> to vector<1x384xf32>
    %cst_10 = arith.constant 5.000000e-01 : f32
    %16 = vector.broadcast %cst_10 : f32 to vector<1x384xf32>
    %17 = arith.mulf %15, %16 : vector<1x384xf32>
    %cst_11 = arith.constant 5.000000e-01 : f32
    %18 = vector.broadcast %cst_11 : f32 to vector<1x384xf32>
    %19 = arith.addf %17, %18 : vector<1x384xf32>
    %20 = vector.extract_strided_slice %19 {offsets = [0, 0], sizes = [1, 128], strides = [1, 1]} : vector<1x384xf32> to vector<1x128xf32>
    %21 = vector.extract_strided_slice %19 {offsets = [0, 128], sizes = [1, 128], strides = [1, 1]} : vector<1x384xf32> to vector<1x128xf32>
    %22 = vector.extract_strided_slice %19 {offsets = [0, 256], sizes = [1, 128], strides = [1, 1]} : vector<1x384xf32> to vector<1x128xf32>
    %23 = vector.extract_strided_slice %14 {offsets = [0, 384], sizes = [1, 128], strides = [1, 1]} : vector<1x512xf32> to vector<1x128xf32>
    %24 = arith.mulf %21, %8 : vector<1x128xf32>
    %25 = arith.mulf %20, %23 : vector<1x128xf32>
    %26 = arith.addf %24, %25 : vector<1x128xf32>
    %27 = math.tanh %26 : vector<1x128xf32>
    %28 = arith.mulf %22, %27 : vector<1x128xf32>
    %29 = vector.extract_strided_slice %5 {offsets = [1, 0], sizes = [1, 512], strides = [1, 1]} : vector<8x512xf32> to vector<1x512xf32>
    %30 = vector.extract_strided_slice %28 {offsets = [0, 0], sizes = [1, 32], strides = [1, 1]} : vector<1x128xf32> to vector<1x32xf32>
    %31 = arith.truncf %30 : vector<1x32xf32> to vector<1x32xbf16>
    %cst_12 = arith.constant dense<0.000000e+00> : vector<1x512xf32>
    %32 = tpu.matmul %31, %6, %cst_12 {dimension_numbers = #tpu.dot_dimension_numbers<[1], [0], [0], [1], [0, 0, 1, 1], [], []>} : vector<1x32xbf16>, vector<32x512xbf16>, vector<1x512xf32> -> vector<1x512xf32>
    %33 = arith.addf %29, %32 : vector<1x512xf32>
    %34 = math.tanh %33 : vector<1x512xf32>
    %35 = vector.extract_strided_slice %34 {offsets = [0, 0], sizes = [1, 384], strides = [1, 1]} : vector<1x512xf32> to vector<1x384xf32>
    %cst_13 = arith.constant 5.000000e-01 : f32
    %36 = vector.broadcast %cst_13 : f32 to vector<1x384xf32>
    %37 = arith.mulf %35, %36 : vector<1x384xf32>
    %cst_14 = arith.constant 5.000000e-01 : f32
    %38 = vector.broadcast %cst_14 : f32 to vector<1x384xf32>
    %39 = arith.addf %37, %38 : vector<1x384xf32>
    %40 = vector.extract_strided_slice %39 {offsets = [0, 0], sizes = [1, 128], strides = [1, 1]} : vector<1x384xf32> to vector<1x128xf32>
    %41 = vector.extract_strided_slice %39 {offsets = [0, 128], sizes = [1, 128], strides = [1, 1]} : vector<1x384xf32> to vector<1x128xf32>
    %42 = vector.extract_strided_slice %39 {offsets = [0, 256], sizes = [1, 128], strides = [1, 1]} : vector<1x384xf32> to vector<1x128xf32>
    %43 = vector.extract_strided_slice %34 {offsets = [0, 384], sizes = [1, 128], strides = [1, 1]} : vector<1x512xf32> to vector<1x128xf32>
    %44 = arith.mulf %41, %26 : vector<1x128xf32>
    %45 = arith.mulf %40, %43 : vector<1x128xf32>
    %46 = arith.addf %44, %45 : vector<1x128xf32>
    %47 = math.tanh %46 : vector<1x128xf32>
    %48 = arith.mulf %42, %47 : vector<1x128xf32>
    %49 = vector.extract_strided_slice %5 {offsets = [2, 0], sizes = [1, 512], strides = [1, 1]} : vector<8x512xf32> to vector<1x512xf32>
    %50 = vector.extract_strided_slice %48 {offsets = [0, 0], sizes = [1, 32], strides = [1, 1]} : vector<1x128xf32> to vector<1x32xf32>
    %51 = arith.truncf %50 : vector<1x32xf32> to vector<1x32xbf16>
    %cst_15 = arith.constant dense<0.000000e+00> : vector<1x512xf32>
    %52 = tpu.matmul %51, %6, %cst_15 {dimension_numbers = #tpu.dot_dimension_numbers<[1], [0], [0], [1], [0, 0, 1, 1], [], []>} : vector<1x32xbf16>, vector<32x512xbf16>, vector<1x512xf32> -> vector<1x512xf32>
    %53 = arith.addf %49, %52 : vector<1x512xf32>
    %54 = math.tanh %53 : vector<1x512xf32>
    %55 = vector.extract_strided_slice %54 {offsets = [0, 0], sizes = [1, 384], strides = [1, 1]} : vector<1x512xf32> to vector<1x384xf32>
    %cst_16 = arith.constant 5.000000e-01 : f32
    %56 = vector.broadcast %cst_16 : f32 to vector<1x384xf32>
    %57 = arith.mulf %55, %56 : vector<1x384xf32>
    %cst_17 = arith.constant 5.000000e-01 : f32
    %58 = vector.broadcast %cst_17 : f32 to vector<1x384xf32>
    %59 = arith.addf %57, %58 : vector<1x384xf32>
    %60 = vector.extract_strided_slice %59 {offsets = [0, 0], sizes = [1, 128], strides = [1, 1]} : vector<1x384xf32> to vector<1x128xf32>
    %61 = vector.extract_strided_slice %59 {offsets = [0, 128], sizes = [1, 128], strides = [1, 1]} : vector<1x384xf32> to vector<1x128xf32>
    %62 = vector.extract_strided_slice %59 {offsets = [0, 256], sizes = [1, 128], strides = [1, 1]} : vector<1x384xf32> to vector<1x128xf32>
    %63 = vector.extract_strided_slice %54 {offsets = [0, 384], sizes = [1, 128], strides = [1, 1]} : vector<1x512xf32> to vector<1x128xf32>
    %64 = arith.mulf %61, %46 : vector<1x128xf32>
    %65 = arith.mulf %60, %63 : vector<1x128xf32>
    %66 = arith.addf %64, %65 : vector<1x128xf32>
    %67 = math.tanh %66 : vector<1x128xf32>
    %68 = arith.mulf %62, %67 : vector<1x128xf32>
    %69 = vector.extract_strided_slice %5 {offsets = [3, 0], sizes = [1, 512], strides = [1, 1]} : vector<8x512xf32> to vector<1x512xf32>
    %70 = vector.extract_strided_slice %68 {offsets = [0, 0], sizes = [1, 32], strides = [1, 1]} : vector<1x128xf32> to vector<1x32xf32>
    %71 = arith.truncf %70 : vector<1x32xf32> to vector<1x32xbf16>
    %cst_18 = arith.constant dense<0.000000e+00> : vector<1x512xf32>
    %72 = tpu.matmul %71, %6, %cst_18 {dimension_numbers = #tpu.dot_dimension_numbers<[1], [0], [0], [1], [0, 0, 1, 1], [], []>} : vector<1x32xbf16>, vector<32x512xbf16>, vector<1x512xf32> -> vector<1x512xf32>
    %73 = arith.addf %69, %72 : vector<1x512xf32>
    %74 = math.tanh %73 : vector<1x512xf32>
    %75 = vector.extract_strided_slice %74 {offsets = [0, 0], sizes = [1, 384], strides = [1, 1]} : vector<1x512xf32> to vector<1x384xf32>
    %cst_19 = arith.constant 5.000000e-01 : f32
    %76 = vector.broadcast %cst_19 : f32 to vector<1x384xf32>
    %77 = arith.mulf %75, %76 : vector<1x384xf32>
    %cst_20 = arith.constant 5.000000e-01 : f32
    %78 = vector.broadcast %cst_20 : f32 to vector<1x384xf32>
    %79 = arith.addf %77, %78 : vector<1x384xf32>
    %80 = vector.extract_strided_slice %79 {offsets = [0, 0], sizes = [1, 128], strides = [1, 1]} : vector<1x384xf32> to vector<1x128xf32>
    %81 = vector.extract_strided_slice %79 {offsets = [0, 128], sizes = [1, 128], strides = [1, 1]} : vector<1x384xf32> to vector<1x128xf32>
    %82 = vector.extract_strided_slice %79 {offsets = [0, 256], sizes = [1, 128], strides = [1, 1]} : vector<1x384xf32> to vector<1x128xf32>
    %83 = vector.extract_strided_slice %74 {offsets = [0, 384], sizes = [1, 128], strides = [1, 1]} : vector<1x512xf32> to vector<1x128xf32>
    %84 = arith.mulf %81, %66 : vector<1x128xf32>
    %85 = arith.mulf %80, %83 : vector<1x128xf32>
    %86 = arith.addf %84, %85 : vector<1x128xf32>
    %87 = math.tanh %86 : vector<1x128xf32>
    %88 = arith.mulf %82, %87 : vector<1x128xf32>
    %89 = vector.extract_strided_slice %5 {offsets = [4, 0], sizes = [1, 512], strides = [1, 1]} : vector<8x512xf32> to vector<1x512xf32>
    %90 = vector.extract_strided_slice %88 {offsets = [0, 0], sizes = [1, 32], strides = [1, 1]} : vector<1x128xf32> to vector<1x32xf32>
    %91 = arith.truncf %90 : vector<1x32xf32> to vector<1x32xbf16>
    %cst_21 = arith.constant dense<0.000000e+00> : vector<1x512xf32>
    %92 = tpu.matmul %91, %6, %cst_21 {dimension_numbers = #tpu.dot_dimension_numbers<[1], [0], [0], [1], [0, 0, 1, 1], [], []>} : vector<1x32xbf16>, vector<32x512xbf16>, vector<1x512xf32> -> vector<1x512xf32>
    %93 = arith.addf %89, %92 : vector<1x512xf32>
    %94 = math.tanh %93 : vector<1x512xf32>
    %95 = vector.extract_strided_slice %94 {offsets = [0, 0], sizes = [1, 384], strides = [1, 1]} : vector<1x512xf32> to vector<1x384xf32>
    %cst_22 = arith.constant 5.000000e-01 : f32
    %96 = vector.broadcast %cst_22 : f32 to vector<1x384xf32>
    %97 = arith.mulf %95, %96 : vector<1x384xf32>
    %cst_23 = arith.constant 5.000000e-01 : f32
    %98 = vector.broadcast %cst_23 : f32 to vector<1x384xf32>
    %99 = arith.addf %97, %98 : vector<1x384xf32>
    %100 = vector.extract_strided_slice %99 {offsets = [0, 0], sizes = [1, 128], strides = [1, 1]} : vector<1x384xf32> to vector<1x128xf32>
    %101 = vector.extract_strided_slice %99 {offsets = [0, 128], sizes = [1, 128], strides = [1, 1]} : vector<1x384xf32> to vector<1x128xf32>
    %102 = vector.extract_strided_slice %99 {offsets = [0, 256], sizes = [1, 128], strides = [1, 1]} : vector<1x384xf32> to vector<1x128xf32>
    %103 = vector.extract_strided_slice %94 {offsets = [0, 384], sizes = [1, 128], strides = [1, 1]} : vector<1x512xf32> to vector<1x128xf32>
    %104 = arith.mulf %101, %86 : vector<1x128xf32>
    %105 = arith.mulf %100, %103 : vector<1x128xf32>
    %106 = arith.addf %104, %105 : vector<1x128xf32>
    %107 = math.tanh %106 : vector<1x128xf32>
    %108 = arith.mulf %102, %107 : vector<1x128xf32>
    %109 = vector.extract_strided_slice %5 {offsets = [5, 0], sizes = [1, 512], strides = [1, 1]} : vector<8x512xf32> to vector<1x512xf32>
    %110 = vector.extract_strided_slice %108 {offsets = [0, 0], sizes = [1, 32], strides = [1, 1]} : vector<1x128xf32> to vector<1x32xf32>
    %111 = arith.truncf %110 : vector<1x32xf32> to vector<1x32xbf16>
    %cst_24 = arith.constant dense<0.000000e+00> : vector<1x512xf32>
    %112 = tpu.matmul %111, %6, %cst_24 {dimension_numbers = #tpu.dot_dimension_numbers<[1], [0], [0], [1], [0, 0, 1, 1], [], []>} : vector<1x32xbf16>, vector<32x512xbf16>, vector<1x512xf32> -> vector<1x512xf32>
    %113 = arith.addf %109, %112 : vector<1x512xf32>
    %114 = math.tanh %113 : vector<1x512xf32>
    %115 = vector.extract_strided_slice %114 {offsets = [0, 0], sizes = [1, 384], strides = [1, 1]} : vector<1x512xf32> to vector<1x384xf32>
    %cst_25 = arith.constant 5.000000e-01 : f32
    %116 = vector.broadcast %cst_25 : f32 to vector<1x384xf32>
    %117 = arith.mulf %115, %116 : vector<1x384xf32>
    %cst_26 = arith.constant 5.000000e-01 : f32
    %118 = vector.broadcast %cst_26 : f32 to vector<1x384xf32>
    %119 = arith.addf %117, %118 : vector<1x384xf32>
    %120 = vector.extract_strided_slice %119 {offsets = [0, 0], sizes = [1, 128], strides = [1, 1]} : vector<1x384xf32> to vector<1x128xf32>
    %121 = vector.extract_strided_slice %119 {offsets = [0, 128], sizes = [1, 128], strides = [1, 1]} : vector<1x384xf32> to vector<1x128xf32>
    %122 = vector.extract_strided_slice %119 {offsets = [0, 256], sizes = [1, 128], strides = [1, 1]} : vector<1x384xf32> to vector<1x128xf32>
    %123 = vector.extract_strided_slice %114 {offsets = [0, 384], sizes = [1, 128], strides = [1, 1]} : vector<1x512xf32> to vector<1x128xf32>
    %124 = arith.mulf %121, %106 : vector<1x128xf32>
    %125 = arith.mulf %120, %123 : vector<1x128xf32>
    %126 = arith.addf %124, %125 : vector<1x128xf32>
    %127 = math.tanh %126 : vector<1x128xf32>
    %128 = arith.mulf %122, %127 : vector<1x128xf32>
    %129 = vector.extract_strided_slice %5 {offsets = [6, 0], sizes = [1, 512], strides = [1, 1]} : vector<8x512xf32> to vector<1x512xf32>
    %130 = vector.extract_strided_slice %128 {offsets = [0, 0], sizes = [1, 32], strides = [1, 1]} : vector<1x128xf32> to vector<1x32xf32>
    %131 = arith.truncf %130 : vector<1x32xf32> to vector<1x32xbf16>
    %cst_27 = arith.constant dense<0.000000e+00> : vector<1x512xf32>
    %132 = tpu.matmul %131, %6, %cst_27 {dimension_numbers = #tpu.dot_dimension_numbers<[1], [0], [0], [1], [0, 0, 1, 1], [], []>} : vector<1x32xbf16>, vector<32x512xbf16>, vector<1x512xf32> -> vector<1x512xf32>
    %133 = arith.addf %129, %132 : vector<1x512xf32>
    %134 = math.tanh %133 : vector<1x512xf32>
    %135 = vector.extract_strided_slice %134 {offsets = [0, 0], sizes = [1, 384], strides = [1, 1]} : vector<1x512xf32> to vector<1x384xf32>
    %cst_28 = arith.constant 5.000000e-01 : f32
    %136 = vector.broadcast %cst_28 : f32 to vector<1x384xf32>
    %137 = arith.mulf %135, %136 : vector<1x384xf32>
    %cst_29 = arith.constant 5.000000e-01 : f32
    %138 = vector.broadcast %cst_29 : f32 to vector<1x384xf32>
    %139 = arith.addf %137, %138 : vector<1x384xf32>
    %140 = vector.extract_strided_slice %139 {offsets = [0, 0], sizes = [1, 128], strides = [1, 1]} : vector<1x384xf32> to vector<1x128xf32>
    %141 = vector.extract_strided_slice %139 {offsets = [0, 128], sizes = [1, 128], strides = [1, 1]} : vector<1x384xf32> to vector<1x128xf32>
    %142 = vector.extract_strided_slice %139 {offsets = [0, 256], sizes = [1, 128], strides = [1, 1]} : vector<1x384xf32> to vector<1x128xf32>
    %143 = vector.extract_strided_slice %134 {offsets = [0, 384], sizes = [1, 128], strides = [1, 1]} : vector<1x512xf32> to vector<1x128xf32>
    %144 = arith.mulf %141, %126 : vector<1x128xf32>
    %145 = arith.mulf %140, %143 : vector<1x128xf32>
    %146 = arith.addf %144, %145 : vector<1x128xf32>
    %147 = math.tanh %146 : vector<1x128xf32>
    %148 = arith.mulf %142, %147 : vector<1x128xf32>
    %149 = vector.extract_strided_slice %5 {offsets = [7, 0], sizes = [1, 512], strides = [1, 1]} : vector<8x512xf32> to vector<1x512xf32>
    %150 = vector.extract_strided_slice %148 {offsets = [0, 0], sizes = [1, 32], strides = [1, 1]} : vector<1x128xf32> to vector<1x32xf32>
    %151 = arith.truncf %150 : vector<1x32xf32> to vector<1x32xbf16>
    %cst_30 = arith.constant dense<0.000000e+00> : vector<1x512xf32>
    %152 = tpu.matmul %151, %6, %cst_30 {dimension_numbers = #tpu.dot_dimension_numbers<[1], [0], [0], [1], [0, 0, 1, 1], [], []>} : vector<1x32xbf16>, vector<32x512xbf16>, vector<1x512xf32> -> vector<1x512xf32>
    %153 = arith.addf %149, %152 : vector<1x512xf32>
    %154 = math.tanh %153 : vector<1x512xf32>
    %155 = vector.extract_strided_slice %154 {offsets = [0, 0], sizes = [1, 384], strides = [1, 1]} : vector<1x512xf32> to vector<1x384xf32>
    %cst_31 = arith.constant 5.000000e-01 : f32
    %156 = vector.broadcast %cst_31 : f32 to vector<1x384xf32>
    %157 = arith.mulf %155, %156 : vector<1x384xf32>
    %cst_32 = arith.constant 5.000000e-01 : f32
    %158 = vector.broadcast %cst_32 : f32 to vector<1x384xf32>
    %159 = arith.addf %157, %158 : vector<1x384xf32>
    %160 = vector.extract_strided_slice %159 {offsets = [0, 0], sizes = [1, 128], strides = [1, 1]} : vector<1x384xf32> to vector<1x128xf32>
    %161 = vector.extract_strided_slice %159 {offsets = [0, 128], sizes = [1, 128], strides = [1, 1]} : vector<1x384xf32> to vector<1x128xf32>
    %162 = vector.extract_strided_slice %159 {offsets = [0, 256], sizes = [1, 128], strides = [1, 1]} : vector<1x384xf32> to vector<1x128xf32>
    %163 = vector.extract_strided_slice %154 {offsets = [0, 384], sizes = [1, 128], strides = [1, 1]} : vector<1x512xf32> to vector<1x128xf32>
    %164 = arith.mulf %161, %146 : vector<1x128xf32>
    %165 = arith.mulf %160, %163 : vector<1x128xf32>
    %166 = arith.addf %164, %165 : vector<1x128xf32>
    %167 = math.tanh %166 : vector<1x128xf32>
    %168 = arith.mulf %162, %167 : vector<1x128xf32>
    %169 = vector.extract_strided_slice %168 {offsets = [0, 0], sizes = [1, 32], strides = [1, 1]} : vector<1x128xf32> to vector<1x32xf32>
    %170 = arith.truncf %169 : vector<1x32xf32> to vector<1x32xbf16>
    %c0_33 = arith.constant 0 : index
    %c0_34 = arith.constant 0 : index
    %171 = vector.load %arg4[%c0_33, %c0_34] : memref<32x4xbf16, #tpu.memory_space<vmem>>, vector<32x4xbf16>
    %cst_35 = arith.constant dense<0.000000e+00> : vector<1x4xf32>
    %172 = tpu.matmul %170, %171, %cst_35 {dimension_numbers = #tpu.dot_dimension_numbers<[1], [0], [0], [1], [0, 0, 1, 1], [], []>} : vector<1x32xbf16>, vector<32x4xbf16>, vector<1x4xf32> -> vector<1x4xf32>
    %c0_36 = arith.constant 0 : index
    %c0_37 = arith.constant 0 : index
    %173 = vector.load %arg5[%c0_36, %c0_37] : memref<1x4xf32, #tpu.memory_space<vmem>>, vector<1x4xf32>
    %174 = arith.addf %172, %173 : vector<1x4xf32>
    %c0_38 = arith.constant 0 : index
    %c0_39 = arith.constant 0 : index
    %175 = vector.load %arg6[%c0_38, %c0_39] : memref<1x4xf32, #tpu.memory_space<vmem>>, vector<1x4xf32>
    tpu.vector_store %arg6[%c0_38, %c0_39], %174 {strides = array<i32>} : memref<1x4xf32, #tpu.memory_space<vmem>>, vector<1x4xf32>,
    return
  }
}

</mosaic_0001>

<bundles_post_ra>
// kernel: lstm_predictor_apply.1
= control target key start
LH: loop header
LB: loop body
LE: loop exit
PB: predicated region body
PF: predicated region fallthrough
CT: control target
= control target key end

     0   :  { %11 = vsyncpa [#allocation3], 0  ;;  %s1404_s0 = inlined_call_operand.vmem [shape: bf16[8,8], index: 0, kind: input, shape index: {}]   ;;  %s1405_s1 = inlined_call_operand.vmem [shape: bf16[8,512], index: 1, kind: input, shape index: {}]   ;;  %s1406_s2 = inlined_call_operand.hbm [shape: bf16[32,512], index: 2, kind: input, shape index: {}]   ;;  %s1407_s3 = inlined_call_operand.vmem [shape: f32[1,512], index: 3, kind: input, shape index: {}]   ;;  %s1408_s4 = inlined_call_operand.vmem [shape: bf16[32,4], index: 4, kind: input, shape index: {}]   ;;  %s1409_s5 = inlined_call_operand.vmem [shape: f32[1,4], index: 5, kind: input, shape index: {}]   ;;  %s1410_s6 = inlined_call_operand.hbm [shape: f32[1,4], index: 6, kind: output, shape index: {}]  }
   0x1   :  { %12 = vsyncpa [#allocation4], 0  ;;  %s21_s23 = sshll.u32 %s1406_s2, 4  ;;  %s1180_s24 = smov [#allocation2]   ;;  %s22_s23 = int_to_ptr.hbm [resolvable:$true] %s21_s23 }
   0x2   :  { %s23_s25 = sshll.u32 %s1180_s24, 4  ;;  %s1181_s26 = smov 256   ;;  %s24_s25 = int_to_ptr.vmem [resolvable:$true] %s23_s25 }
   0x3   :  { %s1182_s27 = smov 16  }
   0x4   :  { %29 = dma.hbm_to_vmem [thread:$0]  %s22_s23, 1024, %s24_s25, [#allocation3], %s1181_s26, %s1181_s26, %s1182_s27  }
   0x5   :  { %1176 = dma.done.wait [#allocation3], 1024  }
   0x6   :  { %1177 = vsyncadd [#allocation3], 4294966272  ;;  %v42_v0 = vld [vmem:[%s1405_s1] sm:$0xff]  ;;  %v43_v1 = vld [vmem:[%s1405_s1 + $0x8] sm:$0xff]  ;;  %vm68_vm0 = vcmask 1043456   ;;  %vm64_vm1 = vcmask 64512  }
   0x7   :  { %v56_v2 = vunpack.c.l.b16 %v42_v0  ;;  %v57_v3 = vunpack.c.h.b16 %v42_v0  ;;  %v58_v4 = vunpack.c.l.b16 %v43_v1  ;;  %v59_v5 = vunpack.c.h.b16 %v43_v1  ;;  %v1038_v6 = vld [vmem:[#allocation2 + $0x2c] sm:$0xf]  ;;  %v992_v7 = vld [vmem:[#allocation2 + $0x38] sm:$0xf0]  ;;  %v982_v8 = vld [vmem:[#allocation2 + $0x20] sm:$0xf] }
   0x8   :  { %v1039_v9 = vld [vmem:[#allocation2 + $0x2c] sm:$0xf0]  ;;  %v1037_v10 = vld [vmem:[#allocation2 + $0x24] sm:$0xf]  ;;  %v984_v15 = vld [vmem:[#allocation2 + $0x30] sm:$0xf0]  ;;  %v1229_v18 = vor.u32 %v1038_v6, %v992_v7 }
   0x9   :  { %v60_v11 = vpack.c.b16 %v56_v2, %v56_v2  ;;  %v61_v12 = vpack.c.b16 %v57_v3, %v57_v3  ;;  %v62_v13 = vpack.c.b16 %v58_v4, %v58_v4  ;;  %v63_v14 = vpack.c.b16 %v59_v5, %v59_v5  ;;  %v990_v16 = vld [vmem:[#allocation2 + $0x28] sm:$0xf]  ;;  %v1040_v17 = vld [vmem:[#allocation2 + $0x34] sm:$0xf0]  ;;  %v1034_v20 = vld [vmem:[#allocation2 + $0xc] sm:$0xf] }
   0xa   :  { %v1231_v19 = vor.u32 %v1039_v9, %v982_v8  ;;  %v976_v21 = vld [vmem:[#allocation2 + $0x18] sm:$0xf0]  ;;  %v966_v22 = vld [vmem:[#allocation2] sm:$0xf]  ;;  %v1035_v27 = vld [vmem:[#allocation2 + $0xc] sm:$0xf0]  ;;  %v1240_v29 = vor.u32 %v1037_v10, %v984_v15  ;;  %v1242_v30 = vor.u32 %v1040_v17, %v990_v16 }
   0xb   :  { %v70_v23 = vsel %vm68_vm0, %v60_v11, 0  ;;  %v73_v24 = vsel %vm68_vm0, %v61_v12, 0  ;;  %v76_v25 = vsel %vm68_vm0, %v62_v13, 0  ;;  %v79_v26 = vsel %vm68_vm0, %v63_v14, 0  ;;  %v41_v28 = vld [vmem:[%s1404_s0] sm:$0xf] }
   0xc   :  { %88 = vmatpush.bf16.msra.mxu0 %v70_v23  ;;  %101 = vmatpush.bf16.msra.mxu1 %v73_v24  ;;  %v1033_v31 = vld [vmem:[#allocation2 + $0x4] sm:$0xf]  ;;  %v1246_v32 = vor.u32 %v1034_v20, %v976_v21  ;;  %v1248_v33 = vor.u32 %v1035_v27, %v966_v22  ;;  %v968_v34 = vld [vmem:[#allocation2 + $0x10] sm:$0xf0]  ;;  %v974_v35 = vld [vmem:[#allocation2 + $0x8] sm:$0xf] }
   0xd   :  { %114 = vmatpush.bf16.msra.mxu2 %v76_v25  ;;  %127 = vmatpush.bf16.msra.mxu3 %v79_v26  ;;  %v1036_v36 = vld [vmem:[#allocation2 + $0x14] sm:$0xf0]  ;;  %v1256_v37 = vor.u32 %v1033_v31, %v968_v34  ;;  %v1183_v39 = vmov 0   ;;  %v44_v44 = vld [vmem:[%s1407_s3] sm:$0xf]  ;;  %vm181_vm2 = vcmask 261120  }
   0xe   :  { %v1258_v38 = vor.u32 %v1036_v36, %v974_v35  ;;  %v46_v47 = vperm.slane %v44_v44, 0  ;;  %v47_v48 = vperm.slane %v44_v44, 1  ;;  %v49_v57 = vperm.slane %v44_v44, 3  ;;  %s1184_s13 = smov [#allocation5]   ;;  %s950_s17 = sshll.u32 %s1410_s6, 4  ;;  %s951_s17 = int_to_ptr.hbm [resolvable:$true] %s950_s17 }
   0xf   :  { %960 = vmatmul.msk.bf16.vlgmr.msra.gmra.mxu0 %vm64_vm1, %v41_v28  ;;  %961 = vmatmul.msk.bf16.vlgmr.msra.gmra.mxu1 %vm64_vm1, %v41_v28  ;;  %v48_v58 = vperm.slane %v44_v44, 2  ;;  %s948_s14 = sshll.u32 %s1184_s13, 4  ;;  %vm941_vm3 = vcmask 24576   ;;  %s949_s14 = int_to_ptr.vmem [resolvable:$true] %s948_s14 }
  0x10   :  { %191 = vmatpush.bf16.msrb.mxu0 %v1231_v19  ;;  %962 = vmatmul.msk.bf16.vlgmr.msra.gmra.mxu2 %vm64_vm1, %v41_v28 }
  0x11   :  { %230 = vmatpush.bf16.msrb.mxu3 %v1229_v18  ;;  %204 = vmatpush.bf16.msrb.mxu1 %v1240_v29 }
  0x12   :  { %963 = vmatmul.msk.bf16.vlgmr.msra.gmra.mxu3 %vm64_vm1, %v41_v28  ;;  %217 = vmatpush.bf16.msrb.mxu2 %v1242_v30 }
  0x14   :  { %192 = vmatpush.bf16.msrb.mxu0 %v1248_v33 }
  0x15   :  { %231 = vmatpush.bf16.msrb.mxu3 %v1246_v32  ;;  %205 = vmatpush.bf16.msrb.mxu1 %v1256_v37 }
  0x16   :  { %218 = vmatpush.bf16.msrb.mxu2 %v1258_v38 }
  0x18   :  { %266 = vmatpush.bf16.msra.mxu0 %v1231_v19 }
  0x19   :  { %305 = vmatpush.bf16.msra.mxu3 %v1229_v18  ;;  %279 = vmatpush.bf16.msra.mxu1 %v1240_v29 }
  0x1a   :  { %292 = vmatpush.bf16.msra.mxu2 %v1242_v30 }
  0x1c   :  { %267 = vmatpush.bf16.msra.mxu0 %v1248_v33 }
  0x1d   :  { %306 = vmatpush.bf16.msra.mxu3 %v1246_v32  ;;  %280 = vmatpush.bf16.msra.mxu1 %v1256_v37 }
  0x1e   :  { %293 = vmatpush.bf16.msra.mxu2 %v1258_v38 }
  0x1f   :  { %193 = vmatmul.bf16.vlgmr.msrb.gmra.mxu0 %v1183_v39  ;;  %206 = vmatmul.bf16.vlgmr.msrb.gmra.mxu1 %v1183_v39 }
  0x20   :  { %219 = vmatmul.bf16.vlgmr.msrb.gmra.mxu2 %v1183_v39  ;;  %359 = vmatpush.bf16.msrb.mxu0 %v1231_v19 }
  0x21   :  { %372 = vmatpush.bf16.msrb.mxu1 %v1240_v29 }
  0x22   :  { %232 = vmatmul.bf16.vlgmr.msrb.gmra.mxu3 %v1183_v39  ;;  %385 = vmatpush.bf16.msrb.mxu2 %v1242_v30 }
  0x23   :  { %398 = vmatpush.bf16.msrb.mxu3 %v1229_v18 }
  0x24   :  { %360 = vmatpush.bf16.msrb.mxu0 %v1248_v33 }
  0x25   :  { %373 = vmatpush.bf16.msrb.mxu1 %v1256_v37 }
  0x26   :  { %386 = vmatpush.bf16.msrb.mxu2 %v1258_v38 }
  0x27   :  { %399 = vmatpush.bf16.msrb.mxu3 %v1246_v32 }
  0x8c   :  { %v90_v40 = vpop.f32.mrf.mxu0  ;;  %v103_v41 = vpop.f32.mrf.mxu1 }
  0x8d   :  { %v1283_v49 = vadd.f32 %v90_v40, %v46_v47  ;;  %v1285_v50 = vadd.f32 %v103_v41, %v47_v48 }
  0x93   :  { %v116_v42 = vpop.f32.mrf.mxu2 }
  0x94   :  { %v92_v45 = vpop.f32.mrf.mxu0  ;;  %v105_v46 = vpop.f32.mrf.mxu1  ;;  %v1291_v62 = vadd.f32 %v116_v42, %v48_v58 }
  0x95   :  { %v129_v43 = vpop.f32.mrf.mxu3 }
  0x96   :  { %v1289_v59 = vadd.f32 %v129_v43, %v49_v57 }
  0x9b   :  { %v118_v51 = vpop.f32.mrf.mxu2 }
  0x9c   :  { %v194_v53 = vpop.f32.mrf.mxu0  ;;  %v207_v54 = vpop.f32.mrf.mxu1 }
  0x9d   :  { %v131_v52 = vpop.f32.mrf.mxu3  ;;  %v237_v55 = vadd.f32 %v194_v53, %v1283_v49  ;;  %v238_v56 = vadd.f32 %v207_v54, %v1285_v50 }
  0x9f   :  { %1048 = vtanh.f32 %v237_v55 }
  0xa0   :  { %1050 = vtanh.f32 %v238_v56 }
  0xa3   :  { %v220_v60 = vpop.f32.mrf.mxu2 }
  0xa4   :  { %v196_v0 = vpop.f32.mrf.mxu0  ;;  %v209_v1 = vpop.f32.mrf.mxu1  ;;  %v239_v4 = vadd.f32 %v220_v60, %v1291_v62 }
  0xa5   :  { %v233_v61 = vpop.f32.mrf.mxu3  ;;  %v1049_v2 = vpop.eup %1048 }
  0xa6   :  { %v240_v63 = vadd.f32 %v233_v61, %v1289_v59  ;;  %v1051_v3 = vpop.eup %1050  ;;  %v245_v6 = vmul.f32 0.5, %v1049_v2 }
  0xa7   :  { %v246_v5 = vmul.f32 0.5, %v1051_v3 }
  0xa8   :  { %1052 = vtanh.f32 %v240_v63  ;;  %v248_v10 = vadd.f32 0.5, %v245_v6 }
  0xa9   :  { %v249_v7 = vadd.f32 0.5, %v246_v5  ;;  %1054 = vtanh.f32 %v239_v4 }
  0xab   :  { %v222_v8 = vpop.f32.mrf.mxu2  ;;  %v251_v12 = vmul.f32 0.0, %v249_v7 }
  0xad   :  { %v235_v9 = vpop.f32.mrf.mxu3 }
  0xae   :  { %v1053_v11 = vpop.eup %1052 }
  0xaf   :  { %v252_v13 = vmul.f32 %v1053_v11, %v248_v10  ;;  %v1055_v14 = vpop.eup %1054 }
  0xb0   :  { %v247_v16 = vmul.f32 0.5, %v1055_v14 }
  0xb1   :  { %v253_v15 = vadd.f32 %v252_v13, %v251_v12 }
  0xb2   :  { %v250_v17 = vadd.f32 0.5, %v247_v16 }
  0xb3   :  { %1056 = vtanh.f32 %v253_v15  ;;  %v339_v53 = vrot.slane %v253_v15, 7 }
  0xb9   :  { %v1057_v20 = vpop.eup %1056 }
  0xba   :  { %v255_v21 = vmul.f32 %v1057_v20, %v250_v17 }
  0xbc   :  { %v256_v22 = vpack.c.bf16 %v255_v21, %v255_v21 }
  0xbe   :  { %996 = vmatmul.msk.bf16.vlgmr.msra.gmra.mxu0 %vm181_vm2, %v256_v22  ;;  %997 = vmatmul.msk.bf16.vlgmr.msra.gmra.mxu1 %vm181_vm2, %v256_v22 }
  0xbf   :  { %998 = vmatmul.msk.bf16.vlgmr.msra.gmra.mxu2 %vm181_vm2, %v256_v22  ;;  %999 = vmatmul.msk.bf16.vlgmr.msra.gmra.mxu3 %vm181_vm2, %v256_v22 }
  0xc0   :  { %490 = vmatpush.bf16.msra.mxu3 %v1229_v18  ;;  %451 = vmatpush.bf16.msra.mxu0 %v1231_v19 }
  0xc1   :  { %464 = vmatpush.bf16.msra.mxu1 %v1240_v29  ;;  %477 = vmatpush.bf16.msra.mxu2 %v1242_v30 }
  0xc4   :  { %491 = vmatpush.bf16.msra.mxu3 %v1246_v32  ;;  %452 = vmatpush.bf16.msra.mxu0 %v1248_v33 }
  0xc5   :  { %465 = vmatpush.bf16.msra.mxu1 %v1256_v37  ;;  %478 = vmatpush.bf16.msra.mxu2 %v1258_v38 }
 0x13b   :  { %v269_v23 = vpop.f32.mrf.mxu0  ;;  %v282_v24 = vpop.f32.mrf.mxu1 }
 0x13c   :  { %v316_v25 = vrot.slane %v269_v23, 7  ;;  %v317_v26 = vrot.slane %v282_v24, 7 }
 0x13e   :  { %v324_v27 = vadd.f32 %v316_v25, %v1283_v49  ;;  %v325_v28 = vadd.f32 %v317_v26, %v1285_v50 }
 0x140   :  { %1058 = vtanh.f32 %v324_v27 }
 0x141   :  { %1060 = vtanh.f32 %v325_v28 }
 0x142   :  { %v295_v31 = vpop.f32.mrf.mxu2  ;;  %v308_v34 = vpop.f32.mrf.mxu3 }
 0x143   :  { %v318_v35 = vrot.slane %v295_v31, 7  ;;  %v319_v36 = vrot.slane %v308_v34, 7  ;;  %v271_v39 = vpop.f32.mrf.mxu0  ;;  %v284_v40 = vpop.f32.mrf.mxu1 }
 0x145   :  { %v327_v41 = vadd.f32 %v319_v36, %v1289_v59  ;;  %v326_v44 = vadd.f32 %v318_v35, %v1291_v62 }
 0x146   :  { %v1059_v42 = vpop.eup %1058 }
 0x147   :  { %v1061_v43 = vpop.eup %1060  ;;  %1062 = vtanh.f32 %v327_v41  ;;  %v332_v46 = vmul.f32 0.5, %v1059_v42 }
 0x148   :  { %v333_v45 = vmul.f32 0.5, %v1061_v43  ;;  %1064 = vtanh.f32 %v326_v44 }
 0x149   :  { %v335_v52 = vadd.f32 0.5, %v332_v46 }
 0x14a   :  { %v297_v47 = vpop.f32.mrf.mxu2  ;;  %v310_v48 = vpop.f32.mrf.mxu3  ;;  %v336_v51 = vadd.f32 0.5, %v333_v45 }
 0x14c   :  { %v341_v55 = vmul.f32 %v339_v53, %v336_v51 }
 0x14d   :  { %v1063_v54 = vpop.eup %1062 }
 0x14e   :  { %v342_v56 = vmul.f32 %v1063_v54, %v335_v52  ;;  %v1065_v57 = vpop.eup %1064 }
 0x14f   :  { %v334_v60 = vmul.f32 0.5, %v1065_v57 }
 0x150   :  { %v343_v58 = vadd.f32 %v342_v56, %v341_v55 }
 0x151   :  { %v337_v61 = vadd.f32 0.5, %v334_v60 }
 0x152   :  { %1066 = vtanh.f32 %v343_v58  ;;  %v432_v27 = vrot.slane %v343_v58, 7 }
 0x158   :  { %v1067_v63 = vpop.eup %1066 }
 0x159   :  { %v345_v0 = vmul.f32 %v1067_v63, %v337_v61 }
 0x15b   :  { %v346_v1 = vpack.c.bf16 %v345_v0, %v345_v0 }
 0x15d   :  { %v348_v2 = vshrl.u32 %v346_v1, 16 }
 0x15f   :  { %1000 = vmatmul.msk.bf16.vlgmr.msrb.gmra.mxu0 %vm181_vm2, %v348_v2  ;;  %1001 = vmatmul.msk.bf16.vlgmr.msrb.gmra.mxu1 %vm181_vm2, %v348_v2 }
 0x160   :  { %1002 = vmatmul.msk.bf16.vlgmr.msrb.gmra.mxu2 %vm181_vm2, %v348_v2  ;;  %1003 = vmatmul.msk.bf16.vlgmr.msrb.gmra.mxu3 %vm181_vm2, %v348_v2 }
 0x161   :  { %584 = vmatpush.bf16.msrb.mxu3 %v1229_v18  ;;  %545 = vmatpush.bf16.msrb.mxu0 %v1231_v19 }
 0x162   :  { %558 = vmatpush.bf16.msrb.mxu1 %v1240_v29  ;;  %571 = vmatpush.bf16.msrb.mxu2 %v1242_v30 }
 0x165   :  { %585 = vmatpush.bf16.msrb.mxu3 %v1246_v32  ;;  %546 = vmatpush.bf16.msrb.mxu0 %v1248_v33 }
 0x166   :  { %559 = vmatpush.bf16.msrb.mxu1 %v1256_v37  ;;  %572 = vmatpush.bf16.msrb.mxu2 %v1258_v38 }
 0x1dc   :  { %v362_v3 = vpop.f32.mrf.mxu0  ;;  %v375_v4 = vpop.f32.mrf.mxu1 }
 0x1dd   :  { %v409_v5 = vrot.slane %v362_v3, 6  ;;  %v410_v6 = vrot.slane %v375_v4, 6 }
 0x1df   :  { %v417_v7 = vadd.f32 %v409_v5, %v1283_v49  ;;  %v418_v8 = vadd.f32 %v410_v6, %v1285_v50 }
 0x1e1   :  { %1068 = vtanh.f32 %v417_v7 }
 0x1e2   :  { %1070 = vtanh.f32 %v418_v8 }
 0x1e3   :  { %v388_v9 = vpop.f32.mrf.mxu2  ;;  %v401_v10 = vpop.f32.mrf.mxu3 }
 0x1e4   :  { %v411_v11 = vrot.slane %v388_v9, 6  ;;  %v412_v12 = vrot.slane %v401_v10, 6  ;;  %v364_v13 = vpop.f32.mrf.mxu0  ;;  %v377_v14 = vpop.f32.mrf.mxu1 }
 0x1e6   :  { %v420_v15 = vadd.f32 %v412_v12, %v1289_v59  ;;  %v419_v20 = vadd.f32 %v411_v11, %v1291_v62 }
 0x1e7   :  { %v1069_v16 = vpop.eup %1068 }
 0x1e8   :  { %v1071_v17 = vpop.eup %1070  ;;  %1072 = vtanh.f32 %v420_v15  ;;  %v425_v22 = vmul.f32 0.5, %v1069_v16 }
 0x1e9   :  { %v426_v21 = vmul.f32 0.5, %v1071_v17  ;;  %1074 = vtanh.f32 %v419_v20 }
 0x1ea   :  { %v428_v26 = vadd.f32 0.5, %v425_v22 }
 0x1eb   :  { %v390_v23 = vpop.f32.mrf.mxu2  ;;  %v403_v24 = vpop.f32.mrf.mxu3  ;;  %v429_v25 = vadd.f32 0.5, %v426_v21 }
 0x1ed   :  { %v434_v31 = vmul.f32 %v432_v27, %v429_v25 }
 0x1ee   :  { %v1073_v28 = vpop.eup %1072 }
 0x1ef   :  { %v435_v34 = vmul.f32 %v1073_v28, %v428_v26  ;;  %v1075_v35 = vpop.eup %1074 }
 0x1f0   :  { %v427_v39 = vmul.f32 0.5, %v1075_v35 }
 0x1f1   :  { %v436_v36 = vadd.f32 %v435_v34, %v434_v31 }
 0x1f2   :  { %v430_v40 = vadd.f32 0.5, %v427_v39 }
 0x1f3   :  { %1076 = vtanh.f32 %v436_v36  ;;  %v524_v7 = vrot.slane %v436_v36, 7 }
 0x1f9   :  { %v1077_v41 = vpop.eup %1076 }
 0x1fa   :  { %v438_v42 = vmul.f32 %v1077_v41, %v430_v40 }
 0x1fc   :  { %v439_v43 = vpack.c.bf16 %v438_v42, %v438_v42 }
 0x1fe   :  { %v441_v44 = vrot.slane %v439_v43, 1 }
 0x200   :  { %1004 = vmatmul.msk.bf16.vlgmr.msra.gmra.mxu0 %vm181_vm2, %v441_v44  ;;  %1005 = vmatmul.msk.bf16.vlgmr.msra.gmra.mxu1 %vm181_vm2, %v441_v44 }
 0x201   :  { %1006 = vmatmul.msk.bf16.vlgmr.msra.gmra.mxu2 %vm181_vm2, %v441_v44  ;;  %1007 = vmatmul.msk.bf16.vlgmr.msra.gmra.mxu3 %vm181_vm2, %v441_v44 }
 0x202   :  { %676 = vmatpush.bf16.msra.mxu3 %v1229_v18  ;;  %637 = vmatpush.bf16.msra.mxu0 %v1231_v19 }
 0x203   :  { %650 = vmatpush.bf16.msra.mxu1 %v1240_v29  ;;  %663 = vmatpush.bf16.msra.mxu2 %v1242_v30 }
 0x206   :  { %677 = vmatpush.bf16.msra.mxu3 %v1246_v32  ;;  %638 = vmatpush.bf16.msra.mxu0 %v1248_v33 }
 0x207   :  { %651 = vmatpush.bf16.msra.mxu1 %v1256_v37  ;;  %664 = vmatpush.bf16.msra.mxu2 %v1258_v38 }
 0x27d   :  { %v454_v45 = vpop.f32.mrf.mxu0  ;;  %v467_v46 = vpop.f32.mrf.mxu1 }
 0x27e   :  { %v501_v47 = vrot.slane %v454_v45, 5  ;;  %v502_v48 = vrot.slane %v467_v46, 5 }
 0x280   :  { %v509_v51 = vadd.f32 %v501_v47, %v1283_v49  ;;  %v510_v52 = vadd.f32 %v502_v48, %v1285_v50 }
 0x282   :  { %1078 = vtanh.f32 %v509_v51 }
 0x283   :  { %1080 = vtanh.f32 %v510_v52 }
 0x284   :  { %v480_v53 = vpop.f32.mrf.mxu2  ;;  %v493_v54 = vpop.f32.mrf.mxu3 }
 0x285   :  { %v503_v55 = vrot.slane %v480_v53, 5  ;;  %v504_v56 = vrot.slane %v493_v54, 5  ;;  %v456_v57 = vpop.f32.mrf.mxu0  ;;  %v469_v58 = vpop.f32.mrf.mxu1 }
 0x287   :  { %v512_v60 = vadd.f32 %v504_v56, %v1289_v59  ;;  %v511_v0 = vadd.f32 %v503_v55, %v1291_v62 }
 0x288   :  { %v1079_v61 = vpop.eup %1078 }
 0x289   :  { %v1081_v63 = vpop.eup %1080  ;;  %1082 = vtanh.f32 %v512_v60  ;;  %v517_v2 = vmul.f32 0.5, %v1079_v61 }
 0x28a   :  { %v518_v1 = vmul.f32 0.5, %v1081_v63  ;;  %1084 = vtanh.f32 %v511_v0 }
 0x28b   :  { %v520_v6 = vadd.f32 0.5, %v517_v2 }
 0x28c   :  { %v482_v3 = vpop.f32.mrf.mxu2  ;;  %v495_v4 = vpop.f32.mrf.mxu3  ;;  %v521_v5 = vadd.f32 0.5, %v518_v1 }
 0x28e   :  { %v526_v9 = vmul.f32 %v524_v7, %v521_v5 }
 0x28f   :  { %v1083_v8 = vpop.eup %1082 }
 0x290   :  { %v527_v10 = vmul.f32 %v1083_v8, %v520_v6  ;;  %v1085_v11 = vpop.eup %1084 }
 0x291   :  { %v519_v13 = vmul.f32 0.5, %v1085_v11 }
 0x292   :  { %v528_v12 = vadd.f32 %v527_v10, %v526_v9 }
 0x293   :  { %v522_v14 = vadd.f32 0.5, %v519_v13 }
 0x294   :  { %1086 = vtanh.f32 %v528_v12  ;;  %v618_v52 = vrot.slane %v528_v12, 7 }
 0x29a   :  { %v1087_v15 = vpop.eup %1086 }
 0x29b   :  { %v530_v16 = vmul.f32 %v1087_v15, %v522_v14 }
 0x29d   :  { %v531_v17 = vpack.c.bf16 %v530_v16, %v530_v16 }
 0x29f   :  { %v533_v20 = vshrl.u32 %v531_v17, 16 }
 0x2a1   :  { %v535_v21 = vrot.slane %v533_v20, 1 }
 0x2a3   :  { %1008 = vmatmul.msk.bf16.vlgmr.msrb.gmra.mxu0 %vm181_vm2, %v535_v21  ;;  %1009 = vmatmul.msk.bf16.vlgmr.msrb.gmra.mxu1 %vm181_vm2, %v535_v21 }
 0x2a4   :  { %1010 = vmatmul.msk.bf16.vlgmr.msrb.gmra.mxu2 %vm181_vm2, %v535_v21  ;;  %1011 = vmatmul.msk.bf16.vlgmr.msrb.gmra.mxu3 %vm181_vm2, %v535_v21 }
 0x2a5   :  { %770 = vmatpush.bf16.msrb.mxu3 %v1229_v18  ;;  %731 = vmatpush.bf16.msrb.mxu0 %v1231_v19 }
 0x2a6   :  { %744 = vmatpush.bf16.msrb.mxu1 %v1240_v29  ;;  %757 = vmatpush.bf16.msrb.mxu2 %v1242_v30 }
 0x2a9   :  { %771 = vmatpush.bf16.msrb.mxu3 %v1246_v32  ;;  %732 = vmatpush.bf16.msrb.mxu0 %v1248_v33 }
 0x2aa   :  { %745 = vmatpush.bf16.msrb.mxu1 %v1256_v37  ;;  %758 = vmatpush.bf16.msrb.mxu2 %v1258_v38 }
 0x320   :  { %v548_v22 = vpop.f32.mrf.mxu0  ;;  %v561_v23 = vpop.f32.mrf.mxu1 }
 0x321   :  { %v595_v24 = vrot.slane %v548_v22, 4  ;;  %v596_v25 = vrot.slane %v561_v23, 4 }
 0x323   :  { %v603_v26 = vadd.f32 %v595_v24, %v1283_v49  ;;  %v604_v27 = vadd.f32 %v596_v25, %v1285_v50 }
 0x325   :  { %1088 = vtanh.f32 %v603_v26 }
 0x326   :  { %1090 = vtanh.f32 %v604_v27 }
 0x327   :  { %v574_v28 = vpop.f32.mrf.mxu2  ;;  %v587_v31 = vpop.f32.mrf.mxu3 }
 0x328   :  { %v597_v34 = vrot.slane %v574_v28, 4  ;;  %v598_v35 = vrot.slane %v587_v31, 4  ;;  %v550_v36 = vpop.f32.mrf.mxu0  ;;  %v563_v39 = vpop.f32.mrf.mxu1 }
 0x32a   :  { %v606_v40 = vadd.f32 %v598_v35, %v1289_v59  ;;  %v605_v43 = vadd.f32 %v597_v34, %v1291_v62 }
 0x32b   :  { %v1089_v41 = vpop.eup %1088 }
 0x32c   :  { %v1091_v42 = vpop.eup %1090  ;;  %1092 = vtanh.f32 %v606_v40  ;;  %v611_v45 = vmul.f32 0.5, %v1089_v41 }
 0x32d   :  { %v612_v44 = vmul.f32 0.5, %v1091_v42  ;;  %1094 = vtanh.f32 %v605_v43 }
 0x32e   :  { %v614_v51 = vadd.f32 0.5, %v611_v45 }
 0x32f   :  { %v576_v46 = vpop.f32.mrf.mxu2  ;;  %v589_v47 = vpop.f32.mrf.mxu3  ;;  %v615_v48 = vadd.f32 0.5, %v612_v44 }
 0x331   :  { %v620_v54 = vmul.f32 %v618_v52, %v615_v48 }
 0x332   :  { %v1093_v53 = vpop.eup %1092 }
 0x333   :  { %v621_v55 = vmul.f32 %v1093_v53, %v614_v51  ;;  %v1095_v56 = vpop.eup %1094 }
 0x334   :  { %v613_v58 = vmul.f32 0.5, %v1095_v56 }
 0x335   :  { %v622_v57 = vadd.f32 %v621_v55, %v620_v54 }
 0x336   :  { %v616_v60 = vadd.f32 0.5, %v613_v58 }
 0x337   :  { %1096 = vtanh.f32 %v622_v57  ;;  %v710_v16 = vrot.slane %v622_v57, 7 }
 0x33d   :  { %v1097_v61 = vpop.eup %1096 }
 0x33e   :  { %v624_v63 = vmul.f32 %v1097_v61, %v616_v60 }
 0x340   :  { %v625_v0 = vpack.c.bf16 %v624_v63, %v624_v63 }
 0x342   :  { %v627_v1 = vrot.slane %v625_v0, 2 }
 0x344   :  { %1012 = vmatmul.msk.bf16.vlgmr.msra.gmra.mxu0 %vm181_vm2, %v627_v1  ;;  %1013 = vmatmul.msk.bf16.vlgmr.msra.gmra.mxu1 %vm181_vm2, %v627_v1 }
 0x345   :  { %1014 = vmatmul.msk.bf16.vlgmr.msra.gmra.mxu2 %vm181_vm2, %v627_v1  ;;  %1015 = vmatmul.msk.bf16.vlgmr.msra.gmra.mxu3 %vm181_vm2, %v627_v1 }
 0x346   :  { %862 = vmatpush.bf16.msra.mxu3 %v1229_v18  ;;  %823 = vmatpush.bf16.msra.mxu0 %v1231_v19 }
 0x347   :  { %836 = vmatpush.bf16.msra.mxu1 %v1240_v29  ;;  %849 = vmatpush.bf16.msra.mxu2 %v1242_v30 }
 0x34a   :  { %863 = vmatpush.bf16.msra.mxu3 %v1246_v32  ;;  %824 = vmatpush.bf16.msra.mxu0 %v1248_v33 }
 0x34b   :  { %837 = vmatpush.bf16.msra.mxu1 %v1256_v37  ;;  %850 = vmatpush.bf16.msra.mxu2 %v1258_v38 }
 0x3c1   :  { %v640_v2 = vpop.f32.mrf.mxu0  ;;  %v653_v3 = vpop.f32.mrf.mxu1 }
 0x3c2   :  { %v687_v4 = vrot.slane %v640_v2, 3  ;;  %v688_v5 = vrot.slane %v653_v3, 3 }
 0x3c4   :  { %v695_v18 = vadd.f32 %v687_v4, %v1283_v49  ;;  %v696_v19 = vadd.f32 %v688_v5, %v1285_v50 }
 0x3c6   :  { %1098 = vtanh.f32 %v695_v18 }
 0x3c7   :  { %1100 = vtanh.f32 %v696_v19 }
 0x3c8   :  { %v666_v29 = vpop.f32.mrf.mxu2  ;;  %v679_v30 = vpop.f32.mrf.mxu3 }
 0x3c9   :  { %v689_v6 = vrot.slane %v666_v29, 3  ;;  %v690_v32 = vrot.slane %v679_v30, 3  ;;  %v642_v7 = vpop.f32.mrf.mxu0  ;;  %v655_v33 = vpop.f32.mrf.mxu1 }
 0x3ca   :  { %v1041_v7 = vld [vmem:[%s1408_s4] sm:$0xff] }
 0x3cb   :  { %v698_v37 = vadd.f32 %v690_v32, %v1289_v59  ;;  %v697_v9 = vadd.f32 %v689_v6, %v1291_v62  ;;  %v1042_v32 = vld [vmem:[%s1408_s4 + $0x8] sm:$0xff] }
 0x3cc   :  { %v1099_v8 = vpop.eup %1098 }
 0x3cd   :  { %v1101_v38 = vpop.eup %1100  ;;  %1102 = vtanh.f32 %v698_v37  ;;  %v703_v11 = vmul.f32 0.5, %v1099_v8 }
 0x3ce   :  { %v704_v10 = vmul.f32 0.5, %v1101_v38  ;;  %1104 = vtanh.f32 %v697_v9 }
 0x3cf   :  { %v706_v15 = vadd.f32 0.5, %v703_v11 }
 0x3d0   :  { %v668_v12 = vpop.f32.mrf.mxu2  ;;  %v681_v13 = vpop.f32.mrf.mxu3  ;;  %v707_v14 = vadd.f32 0.5, %v704_v10 }
 0x3d2   :  { %v712_v20 = vmul.f32 %v710_v16, %v707_v14 }
 0x3d3   :  { %v1103_v17 = vpop.eup %1102 }
 0x3d4   :  { %v713_v21 = vmul.f32 %v1103_v17, %v706_v15  ;;  %v1105_v22 = vpop.eup %1104 }
 0x3d5   :  { %v705_v24 = vmul.f32 0.5, %v1105_v22 }
 0x3d6   :  { %v714_v23 = vadd.f32 %v713_v21, %v712_v20 }
 0x3d7   :  { %v708_v25 = vadd.f32 0.5, %v705_v24 }
 0x3d8   :  { %1106 = vtanh.f32 %v714_v23  ;;  %v804_v63 = vrot.slane %v714_v23, 7 }
 0x3de   :  { %v1107_v26 = vpop.eup %1106 }
 0x3df   :  { %v716_v27 = vmul.f32 %v1107_v26, %v708_v25 }
 0x3e1   :  { %v717_v28 = vpack.c.bf16 %v716_v27, %v716_v27 }
 0x3e3   :  { %v719_v31 = vshrl.u32 %v717_v28, 16 }
 0x3e5   :  { %v721_v34 = vrot.slane %v719_v31, 2 }
 0x3e7   :  { %1016 = vmatmul.msk.bf16.vlgmr.msrb.gmra.mxu0 %vm181_vm2, %v721_v34  ;;  %1017 = vmatmul.msk.bf16.vlgmr.msrb.gmra.mxu1 %vm181_vm2, %v721_v34 }
 0x3e8   :  { %1018 = vmatmul.msk.bf16.vlgmr.msrb.gmra.mxu2 %vm181_vm2, %v721_v34  ;;  %1019 = vmatmul.msk.bf16.vlgmr.msrb.gmra.mxu3 %vm181_vm2, %v721_v34 }
 0x3e9   :  { %934 = vmatpush.bf16.msrb.mxu0 %v1042_v32 }
 0x3ed   :  { %935 = vmatpush.bf16.msrb.mxu0 %v1041_v7 }
 0x464   :  { %v734_v35 = vpop.f32.mrf.mxu0  ;;  %v747_v36 = vpop.f32.mrf.mxu1 }
 0x465   :  { %v781_v39 = vrot.slane %v734_v35, 2  ;;  %v782_v40 = vrot.slane %v747_v36, 2 }
 0x467   :  { %v789_v41 = vadd.f32 %v781_v39, %v1283_v49  ;;  %v790_v42 = vadd.f32 %v782_v40, %v1285_v50 }
 0x469   :  { %1108 = vtanh.f32 %v789_v41 }
 0x46a   :  { %1110 = vtanh.f32 %v790_v42 }
 0x46b   :  { %v760_v43 = vpop.f32.mrf.mxu2  ;;  %v773_v44 = vpop.f32.mrf.mxu3 }
 0x46c   :  { %v783_v45 = vrot.slane %v760_v43, 2  ;;  %v784_v46 = vrot.slane %v773_v44, 2  ;;  %v736_v47 = vpop.f32.mrf.mxu0  ;;  %v749_v48 = vpop.f32.mrf.mxu1  ;;  %v908_v44 = vld [vmem:[%s1409_s5] sm:$0x1] }
 0x46e   :  { %v792_v51 = vadd.f32 %v784_v46, %v1289_v59  ;;  %v791_v54 = vadd.f32 %v783_v45, %v1291_v62 }
 0x46f   :  { %v1109_v52 = vpop.eup %1108 }
 0x470   :  { %v1111_v53 = vpop.eup %1110  ;;  %1112 = vtanh.f32 %v792_v51  ;;  %v797_v56 = vmul.f32 0.5, %v1109_v52 }
 0x471   :  { %v798_v55 = vmul.f32 0.5, %v1111_v53  ;;  %1114 = vtanh.f32 %v791_v54 }
 0x472   :  { %v800_v61 = vadd.f32 0.5, %v797_v56 }
 0x473   :  { %v762_v57 = vpop.f32.mrf.mxu2  ;;  %v775_v58 = vpop.f32.mrf.mxu3  ;;  %v801_v60 = vadd.f32 0.5, %v798_v55 }
 0x475   :  { %v806_v1 = vmul.f32 %v804_v63, %v801_v60 }
 0x476   :  { %v1113_v0 = vpop.eup %1112 }
 0x477   :  { %v807_v2 = vmul.f32 %v1113_v0, %v800_v61  ;;  %v1115_v3 = vpop.eup %1114 }
 0x478   :  { %v799_v5 = vmul.f32 0.5, %v1115_v3 }
 0x479   :  { %v808_v4 = vadd.f32 %v807_v2, %v806_v1 }
 0x47a   :  { %v802_v18 = vadd.f32 0.5, %v799_v5 }
 0x47b   :  { %1116 = vtanh.f32 %v808_v4  ;;  %v896_v27 = vrot.slane %v808_v4, 7 }
 0x481   :  { %v1117_v19 = vpop.eup %1116 }
 0x482   :  { %v810_v29 = vmul.f32 %v1117_v19, %v802_v18 }
 0x484   :  { %v811_v30 = vpack.c.bf16 %v810_v29, %v810_v29 }
 0x486   :  { %v813_v6 = vrot.slane %v811_v30, 3 }
 0x488   :  { %1020 = vmatmul.msk.bf16.vlgmr.msra.gmra.mxu0 %vm181_vm2, %v813_v6  ;;  %1021 = vmatmul.msk.bf16.vlgmr.msra.gmra.mxu1 %vm181_vm2, %v813_v6 }
 0x489   :  { %1022 = vmatmul.msk.bf16.vlgmr.msra.gmra.mxu2 %vm181_vm2, %v813_v6  ;;  %1023 = vmatmul.msk.bf16.vlgmr.msra.gmra.mxu3 %vm181_vm2, %v813_v6 }
 0x505   :  { %v826_v33 = vpop.f32.mrf.mxu0  ;;  %v839_v37 = vpop.f32.mrf.mxu1 }
 0x506   :  { %v873_v8 = vrot.slane %v826_v33, 1  ;;  %v874_v38 = vrot.slane %v839_v37, 1 }
 0x508   :  { %v881_v9 = vadd.f32 %v873_v8, %v1283_v49  ;;  %v882_v10 = vadd.f32 %v874_v38, %v1285_v50 }
 0x50a   :  { %1118 = vtanh.f32 %v881_v9 }
 0x50b   :  { %1120 = vtanh.f32 %v882_v10 }
 0x50c   :  { %v852_v11 = vpop.f32.mrf.mxu2  ;;  %v865_v12 = vpop.f32.mrf.mxu3 }
 0x50d   :  { %v875_v13 = vrot.slane %v852_v11, 1  ;;  %v876_v14 = vrot.slane %v865_v12, 1  ;;  %v828_v15 = vpop.f32.mrf.mxu0  ;;  %v841_v16 = vpop.f32.mrf.mxu1 }
 0x50f   :  { %v884_v17 = vadd.f32 %v876_v14, %v1289_v59  ;;  %v883_v22 = vadd.f32 %v875_v13, %v1291_v62 }
 0x510   :  { %v1119_v20 = vpop.eup %1118 }
 0x511   :  { %v1121_v21 = vpop.eup %1120  ;;  %1122 = vtanh.f32 %v884_v17  ;;  %v889_v24 = vmul.f32 0.5, %v1119_v20 }
 0x512   :  { %v890_v23 = vmul.f32 0.5, %v1121_v21  ;;  %1124 = vtanh.f32 %v883_v22 }
 0x513   :  { %v892_v26 = vadd.f32 0.5, %v889_v24 }
 0x514   :  { %v854_v49 = vpop.f32.mrf.mxu2  ;;  %v867_v25 = vpop.f32.mrf.mxu3  ;;  %v893_v50 = vadd.f32 0.5, %v890_v23 }
 0x516   :  { %v898_v31 = vmul.f32 %v896_v27, %v893_v50 }
 0x517   :  { %v1123_v28 = vpop.eup %1122 }
 0x518   :  { %v899_v34 = vmul.f32 %v1123_v28, %v892_v26  ;;  %v1125_v35 = vpop.eup %1124 }
 0x519   :  { %v891_v59 = vmul.f32 0.5, %v1125_v35 }
 0x51a   :  { %v900_v36 = vadd.f32 %v899_v34, %v898_v31 }
 0x51b   :  { %v894_v39 = vadd.f32 0.5, %v891_v59 }
 0x51c   :  { %1126 = vtanh.f32 %v900_v36 }
 0x522   :  { %v1127_v40 = vpop.eup %1126 }
 0x523   :  { %v902_v41 = vmul.f32 %v1127_v40, %v894_v39 }
 0x525   :  { %v903_v62 = vpack.c.bf16 %v902_v41, %v902_v41 }
 0x527   :  { %v910_v42 = vshrl.u32 %v903_v62, 16 }
 0x529   :  { %v912_v43 = vrot.slane %v910_v42, 3 }
 0x52b   :  { %1032 = vmatmul.msk.bf16.vlgmr.msrb.gmra.mxu0 %vm181_vm2, %v912_v43 }
 0x5a8   :  { %v937_v45 = vpop.f32.mrf.mxu0 }
 0x5a9   :  { %v938_v46 = vadd.f32 %v937_v45, %v908_v44 }
 0x5ab   :  { %942 = vst.msk [vmem:[#allocation5] sm:$0x1] %vm941_vm3, %v938_v46 }
 0x5ac   :  { %953 = dma.vmem_to_hbm [thread:$0]  %s949_s14, 16, %s951_s17, [#allocation4]  }
 0x5b0   :  { %v939_v47 = vpop.f32.mrf.mxu0 }
 0x5b1   :  { %1178 = dma.done.wait [#allocation4], 16  }
 0x5b2   :  { %1179 = vsyncadd [#allocation4], 4294967280 }
 0x5b3   :  { %958 = vsyncpa [#allocation3], 1 }
 0x5b4   :  { %959 = vsyncpa [#allocation4], 1 }

</bundles_post_ra>
